<compile_context>
chip_gen: v7x
topology: tpu7x:2x2x1
jax: 0.10.0
libtpu: 0.0.40
codegen_flags: <defaults>
</compile_context>

<pallas_src>
import jax
import jax.numpy as jnp
from jax.experimental import pallas as pl
from jax.experimental.pallas import tpu as pltpu

_LANE = 128
_VMEM_BUDGET = 24 * 1024 * 1024        # double-buffered working-set cap (all gens)
_VMEM_LIMIT_BYTES = 32 * 1024 * 1024   # explicit scoped-VMEM limit


def _round_up(x: int, m: int) -> int:
    return ((x + m - 1) // m) * m


def _is_bf16(dt) -> bool:
    return jnp.dtype(dt) == jnp.dtype(jnp.bfloat16)


# ---------------------------------------------------------------------------
# Kernels
# ---------------------------------------------------------------------------
def _linear_kernel_single_k(x_ref, w_ref, b_ref, o_ref):
    """Whole-K fast path (2-D grid): one MXU pass, no accumulator."""
    acc = jnp.dot(x_ref[...], w_ref[...], preferred_element_type=jnp.float32)
    o_ref[...] = (acc + b_ref[...].astype(jnp.float32)).astype(o_ref.dtype)


def _linear_kernel_f32_out(x_ref, w_ref, b_ref, o_ref):
    """Multi-K path, f32 output: accumulate directly into the resident o_ref."""
    k = pl.program_id(2)

    @pl.when(k == 0)
    def _():
        # Seed with the bias (broadcast over rows) — no separate add pass.
        o_ref[...] = jnp.broadcast_to(b_ref[...].astype(jnp.float32),
                                      o_ref.shape)

    o_ref[...] += jnp.dot(x_ref[...], w_ref[...],
                          preferred_element_type=jnp.float32)


def _linear_kernel_scratch(x_ref, w_ref, b_ref, o_ref, acc_ref):
    """Multi-K path, non-f32 output: f32 VMEM accumulator, cast at the end."""
    k = pl.program_id(2)

    @pl.when(k == 0)
    def _():
        acc_ref[...] = jnp.broadcast_to(b_ref[...].astype(jnp.float32),
                                        acc_ref.shape)

    acc_ref[...] += jnp.dot(x_ref[...], w_ref[...],
                            preferred_element_type=jnp.float32)

    @pl.when(k == pl.num_programs(2) - 1)
    def _():
        o_ref[...] = acc_ref[...].astype(o_ref.dtype)


# ---------------------------------------------------------------------------
# Tiling plan
# ---------------------------------------------------------------------------
def _plan_tiles(batch, in_features, out_features, itemsize, sublane):
    """Weight-dominated linear: maximize tm first (reduces W re-streaming),
    then tn, then tk, while keeping the double-buffered working set under
    the shared v5e/v6e/v7x VMEM budget."""
    tm = min(512, _round_up(batch, sublane))
    tn = min(512, _round_up(out_features, _LANE))
    tk = min(2048, _round_up(in_features, _LANE))

    def ws(tm_, tn_, tk_):
        # 2x double-buffered inputs + 2x output + worst-case f32 accumulator.
        return (2 * (tm_ * tk_ + tk_ * tn_) + 2 * tm_ * tn_) * itemsize \
               + tm_ * tn_ * 4

    while ws(tm, tn, tk) > _VMEM_BUDGET and tk > _LANE:
        tk = max(_LANE, (tk // 2) // _LANE * _LANE)
    while ws(tm, tn, tk) > _VMEM_BUDGET and tn > _LANE:
        tn = max(_LANE, (tn // 2) // _LANE * _LANE)
    return tm, tn, tk


# ---------------------------------------------------------------------------
# One-time parameter packing (hoisted out of the per-call hot path)
# ---------------------------------------------------------------------------
def prepare_linear(weight, bias, *, batch_hint=8, compute_dtype=None):
    """Pack nn.Linear params once: W -> padded (K_pad, N_pad) '(in, out)'
    layout (MXU-ready, no per-call transpose/pad), bias -> padded (1, N_pad).

    compute_dtype=jnp.bfloat16 optionally halves HBM bytes and uses the MXU's
    native throughput (accumulation stays f32 in-kernel).
    """
    out_features, in_features = weight.shape
    cdt = jnp.dtype(compute_dtype) if compute_dtype is not None \
        else jnp.dtype(weight.dtype)
    sublane = 16 if _is_bf16(cdt) else 8

    _, tn, tk = _plan_tiles(batch_hint, in_features, out_features,
                            cdt.itemsize, sublane)
    K_pad = _round_up(in_features, tk)
    N_pad = _round_up(out_features, tn)

    w_t = weight.T.astype(cdt)                       # (in, out): no in-kernel .T
    if w_t.shape != (K_pad, N_pad):
        w_t = jnp.pad(w_t, ((0, K_pad - in_features),
                            (0, N_pad - out_features)))
    b_p = bias.reshape(1, out_features)
    if b_p.shape != (1, N_pad):
        b_p = jnp.pad(b_p, ((0, 0), (0, N_pad - out_features)))

    return {
        "w_t": w_t,                  # (K_pad, N_pad), compute dtype
        "b": b_p,                    # (1, N_pad)
        "in_features": in_features,
        "out_features": out_features,
        "tn": tn,
        "tk": tk,
    }


# ---------------------------------------------------------------------------
# Forward
# ---------------------------------------------------------------------------
def linear_forward(x, params):
    """y = x @ W.T + b using the pre-packed params from prepare_linear."""
    w_t, b_p = params["w_t"], params["b"]
    in_features = params["in_features"]
    out_features = params["out_features"]
    tn, tk = params["tn"], params["tk"]

    B = x.shape[0]
    K_pad, N_pad = w_t.shape
    compute_dtype = jnp.dtype(w_t.dtype)
    sublane = 16 if _is_bf16(compute_dtype) else 8
    out_dtype = x.dtype

    tm = min(512, _round_up(B, sublane))
    B_pad = _round_up(B, tm)

    x_p = x.astype(compute_dtype)
    if x_p.shape != (B_pad, K_pad):
        x_p = jnp.pad(x_p, ((0, B_pad - B), (0, K_pad - in_features)))

    grid_b, grid_n, grid_k = B_pad // tm, N_pad // tn, K_pad // tk

    # Honest bytes: each operand is re-streamed once per tile of the other
    # parallel axis.
    itemsize = compute_dtype.itemsize
    bytes_accessed = (grid_n * x_p.size * itemsize
                      + grid_b * w_t.size * itemsize
                      + grid_b * b_p.size * jnp.dtype(b_p.dtype).itemsize
                      + B_pad * N_pad * jnp.dtype(out_dtype).itemsize)
    cost = pl.CostEstimate(flops=2 * B_pad * K_pad * N_pad,
                           transcendentals=0,
                           bytes_accessed=int(bytes_accessed))

    if grid_k == 1:
        # Whole-K fast path: 2-D grid, no scratch, no pl.when branches.
        out_padded = pl.pallas_call(
            _linear_kernel_single_k,
            out_shape=jax.ShapeDtypeStruct((B_pad, N_pad), out_dtype),
            grid_spec=pltpu.PrefetchScalarGridSpec(
                num_scalar_prefetch=0,
                grid=(grid_b, grid_n),
                in_specs=[
                    pl.BlockSpec((tm, K_pad), lambda i, j: (i, 0)),   # x
                    pl.BlockSpec((K_pad, tn), lambda i, j: (0, j)),   # w (in,out)
                    pl.BlockSpec((1, tn), lambda i, j: (0, j)),       # bias
                ],
                out_specs=pl.BlockSpec((tm, tn), lambda i, j: (i, j)),
            ),
            compiler_params=pltpu.CompilerParams(
                dimension_semantics=("parallel", "parallel"),
                vmem_limit_bytes=_VMEM_LIMIT_BYTES,
            ),
            cost_estimate=cost,
        )(x_p, w_t, b_p)
    else:
        in_specs = [
            pl.BlockSpec((tm, tk), lambda i, j, k: (i, k)),   # x
            pl.BlockSpec((tk, tn), lambda i, j, k: (k, j)),   # w (in,out)
            pl.BlockSpec((1, tn), lambda i, j, k: (0, j)),    # bias
        ]
        out_spec = pl.BlockSpec((tm, tn), lambda i, j, k: (i, j))
        if jnp.dtype(out_dtype) == jnp.dtype(jnp.float32):
            kernel, scratch = _linear_kernel_f32_out, []
        else:
            kernel = _linear_kernel_scratch
            scratch = [pltpu.VMEM((tm, tn), jnp.float32)]

        out_padded = pl.pallas_call(
            kernel,
            out_shape=jax.ShapeDtypeStruct((B_pad, N_pad), out_dtype),
            grid_spec=pltpu.PrefetchScalarGridSpec(
                num_scalar_prefetch=0,
                grid=(grid_b, grid_n, grid_k),
                in_specs=in_specs,
                out_specs=out_spec,
                scratch_shapes=scratch,
            ),
            compiler_params=pltpu.CompilerParams(
                dimension_semantics=("parallel", "parallel", "arbitrary"),
                vmem_limit_bytes=_VMEM_LIMIT_BYTES,
            ),
            cost_estimate=cost,
        )(x_p, w_t, b_p)

    if (B_pad, N_pad) != (B, out_features):
        out_padded = out_padded[:B, :out_features]
    return out_padded


if __name__ == "__main__":
    input_size = 5    # matches the tutorial's `input_size = 5`
    output_size = 2   # matches the tutorial's `output_size = 2`
    batch = 8         # small batch

    key = jax.random.PRNGKey(0)
    kx, kw, kb = jax.random.split(key, 3)

    # Deterministic parameter init mimicking nn.Linear default:
    # uniform(-1/sqrt(in_features), 1/sqrt(in_features))
    bound = 1.0 / (input_size ** 0.5)
    weight = jax.random.uniform(
        kw, (output_size, input_size), minval=-bound, maxval=bound,
        dtype=jnp.float32)
    bias = jax.random.uniform(
        kb, (output_size,), minval=-bound, maxval=bound, dtype=jnp.float32)
    x = jax.random.normal(kx, (batch, input_size), dtype=jnp.float32)

    # One-time parameter packing (not in the per-call hot path).
    params = prepare_linear(weight, bias, batch_hint=batch)

    fwd = jax.jit(lambda xx: linear_forward(xx, params))
    out = jax.block_until_ready(fwd(x))

    # Mirror the PyTorch module's print of input/output sizes (host-side).
    print("\tIn Model: input size", x.shape, "output size", out.shape)

    # Correctness check against plain-JAX reference.
    ref = x @ weight.T + bias
    assert jnp.allclose(out, ref, atol=1e-5, rtol=1e-5), "mismatch vs reference"

    print("KERNEL_OK")
</pallas_src>

<mosaic_0001>
module attributes {stable_mosaic.version = 11 : i64} {
  func.func @_linear_kernel_single_k(%arg0: i32, %arg1: i32, %arg2: memref<8x128xf32, #tpu.memory_space<vmem>>, %arg3: memref<128x128xf32, #tpu.memory_space<vmem>>, %arg4: memref<1x128xf32, #tpu.memory_space<vmem>>, %arg5: memref<8x128xf32, #tpu.memory_space<vmem>>) attributes {dimension_semantics = [#tpu.dimension_semantics<parallel>, #tpu.dimension_semantics<parallel>], iteration_bounds = array<i64: 1, 1>, scalar_prefetch = 0 : i64, scratch_operands = 0 : i64, tpu.core_type = #tpu.core_type<tc>, window_params = [{transform_indices = @transform_0, window_bounds = array<i64: 8, 128>}, {transform_indices = @transform_1, window_bounds = array<i64: 128, 128>}, {transform_indices = @transform_2, window_bounds = array<i64: 1, 128>}, {transform_indices = @transform_3, window_bounds = array<i64: 8, 128>}]} {
    %c0 = arith.constant 0 : index
    %c0_0 = arith.constant 0 : index
    %0 = vector.load %arg2[%c0, %c0_0] : memref<8x128xf32, #tpu.memory_space<vmem>>, vector<8x128xf32>
    %c0_1 = arith.constant 0 : index
    %c0_2 = arith.constant 0 : index
    %1 = vector.load %arg3[%c0_1, %c0_2] : memref<128x128xf32, #tpu.memory_space<vmem>>, vector<128x128xf32>
    %cst = arith.constant dense<0.000000e+00> : vector<8x128xf32>
    %2 = tpu.matmul %0, %1, %cst {dimension_numbers = #tpu.dot_dimension_numbers<[1], [0], [0], [1], [0, 0, 1, 1], [], []>} : vector<8x128xf32>, vector<128x128xf32>, vector<8x128xf32> -> vector<8x128xf32>
    %c0_3 = arith.constant 0 : index
    %c0_4 = arith.constant 0 : index
    %3 = vector.load %arg4[%c0_3, %c0_4] : memref<1x128xf32, #tpu.memory_space<vmem>>, vector<1x128xf32>
    %4 = vector.broadcast %3 : vector<1x128xf32> to vector<8x128xf32>
    %5 = arith.addf %2, %4 : vector<8x128xf32>
    %c0_5 = arith.constant 0 : index
    %c0_6 = arith.constant 0 : index
    %6 = vector.load %arg5[%c0_5, %c0_6] : memref<8x128xf32, #tpu.memory_space<vmem>>, vector<8x128xf32>
    tpu.vector_store %arg5[%c0_5, %c0_6], %5 {strides = array<i32>} : memref<8x128xf32, #tpu.memory_space<vmem>>, vector<8x128xf32>,
    return
  }
  func.func @transform_0(%arg0: i32, %arg1: i32) -> (i32, i32) {
    %c0_i32 = arith.constant 0 : i32
    %c0_i32_0 = arith.constant 0 : i32
    return %arg0, %c0_i32 : i32, i32
  }
  func.func @transform_1(%arg0: i32, %arg1: i32) -> (i32, i32) {
    %c0_i32 = arith.constant 0 : i32
    %c0_i32_0 = arith.constant 0 : i32
    return %c0_i32, %arg1 : i32, i32
  }
  func.func @transform_2(%arg0: i32, %arg1: i32) -> (i32, i32) {
    %c0_i32 = arith.constant 0 : i32
    %c0_i32_0 = arith.constant 0 : i32
    return %c0_i32, %arg1 : i32, i32
  }
  func.func @transform_3(%arg0: i32, %arg1: i32) -> (i32, i32) {
    %c0_i32 = arith.constant 0 : i32
    return %arg0, %arg1 : i32, i32
  }
}

</mosaic_0001>

<bundles_post_ra>
// kernel: _lambda_.1
= control target key start
LH: loop header
LB: loop body
LE: loop exit
PB: predicated region body
PF: predicated region fallthrough
CT: control target
= control target key end

     0   :  { %8 = vsyncpa [#allocation3], 0  ;;  %s235_s12 = smov [#allocation2]   ;;  %s282_s0 = inlined_call_operand.vmem [shape: f32[8,128], index: 0, kind: input, shape index: {}]   ;;  %s283_s1 = inlined_call_operand.hbm [shape: f32[128,128], index: 1, kind: input, shape index: {}]   ;;  %s284_s2 = inlined_call_operand.vmem [shape: f32[1,128], index: 2, kind: input, shape index: {}]   ;;  %s285_s3 = inlined_call_operand.vmem [shape: f32[8,128], index: 3, kind: output, shape index: {}]  }
   0x1   :  { %s16_s13 = sshll.u32 %s235_s12, 4  ;;  %s211_s16 = scalar_lea.hbm %s283_s1, 2048  ;;  %s17_s13 = int_to_ptr.vmem [resolvable:$true] %s16_s13 }
   0x2   :  { %p212_p0 = scmp.ne.s32.totalorder %s283_s1, %s211_s16  ;;  %p215_p1 = scmp.lt.u32.totalorder %s211_s16, %s283_s1 }
   0x4   :  { %p217_p2 = pnand %p215_p1, %p212_p0 }
   0x6   :  { %220 = shalt.err (!%p217_p2)
}
   0x7   :  { %s221_s21 = scalar_lea.vmem %s17_s13, 2048  ;;  %p226_p4 = scmp.lt.s32.totalorder %s17_s13, %s17_s13 }
   0x8   :  { %p222_p3 = scmp.ne.s32.totalorder %s17_s13, %s221_s21  ;;  %p227_p5 = scmp.lt.s32.totalorder %s221_s21, %s221_s21 }
   0xa   :  { %p228_p6 = por %p227_p5, %p226_p4 }
   0xc   :  { %p229_p7 = pnand %p228_p6, %p222_p3 }
   0xe   :  { %232 = shalt.err (!%p229_p7)
}
   0xf   :  { %s236_s22 = smov 128   ;;  %s237_s23 = smov 8  }
  0x10   :  { %22 = dma.hbm_to_vmem [thread:$0]  %s283_s1, 2048, %s17_s13, [#allocation3], %s236_s22, %s236_s22, %s237_s23  }
  0x11   :  { %233 = dma.done.wait [#allocation3], 2048  }
  0x12   :  { %234 = vsyncadd [#allocation3], 4294965248  ;;  %v238_v0 = vmov 0.0|0.0   ;;  %vm239_vm0 = vmmov 0   ;;  %v240_v1 = vmov 0.0   ;;  %v29_v2 = vld [vmem:[#allocation2] sm:$0xff] }
  0x13   :  { %181 = vmatprep.subr.bf16.mxu0 %v238_v0  ;;  %178 = vmatprep.mubr.msk.f32.mxu0 %vm239_vm0, %v240_v1  ;;  %v30_v3 = vld [vmem:[#allocation2 + $0x8] sm:$0xff]  ;;  %v31_v4 = vld [vmem:[#allocation2 + $0x10] sm:$0xff]  ;;  %v32_v6 = vld [vmem:[#allocation2 + $0x18] sm:$0xff] }
  0x14   :  { %v182_v5 = vpack.c.bf16 %v30_v3, %v29_v2  ;;  %v185_v7 = vpack.c.bf16 %v32_v6, %v31_v4  ;;  %v33_v8 = vld [vmem:[#allocation2 + $0x20] sm:$0xff]  ;;  %v34_v9 = vld [vmem:[#allocation2 + $0x28] sm:$0xff]  ;;  %v35_v11 = vld [vmem:[#allocation2 + $0x30] sm:$0xff] }
  0x15   :  { %v188_v10 = vpack.c.bf16 %v34_v9, %v33_v8  ;;  %v36_v12 = vld [vmem:[#allocation2 + $0x38] sm:$0xff]  ;;  %v37_v14 = vld [vmem:[#allocation2 + $0x40] sm:$0xff]  ;;  %v38_v15 = vld [vmem:[#allocation2 + $0x48] sm:$0xff] }
  0x16   :  { %183 = vmatpush3.bf16.msra.mxu0 %v182_v5  ;;  %v191_v13 = vpack.c.bf16 %v36_v12, %v35_v11  ;;  %v194_v16 = vpack.c.bf16 %v38_v15, %v37_v14  ;;  %v39_v17 = vld [vmem:[#allocation2 + $0x50] sm:$0xff]  ;;  %v40_v18 = vld [vmem:[#allocation2 + $0x58] sm:$0xff]  ;;  %v41_v20 = vld [vmem:[#allocation2 + $0x60] sm:$0xff] }
  0x17   :  { %184 = vmatprep.subr.bf16.mxu0 %v238_v0  ;;  %v197_v19 = vpack.c.bf16 %v40_v18, %v39_v17  ;;  %v42_v21 = vld [vmem:[#allocation2 + $0x68] sm:$0xff]  ;;  %v43_v23 = vld [vmem:[#allocation2 + $0x70] sm:$0xff]  ;;  %v44_v24 = vld [vmem:[#allocation2 + $0x78] sm:$0xff] }
  0x18   :  { %v200_v22 = vpack.c.bf16 %v42_v21, %v41_v20  ;;  %v203_v25 = vpack.c.bf16 %v44_v24, %v43_v23  ;;  %v28_v26 = vld [vmem:[%s282_s0] sm:$0xff] }
  0x19   :  { %v128_v27 = vld [vmem:[%s284_s2] ss:$0 sm:$0xff] }
  0x1a   :  { %186 = vmatpush3.bf16.msra.mxu0 %v185_v7 }
  0x1b   :  { %187 = vmatprep.subr.bf16.mxu0 %v238_v0 }
  0x1e   :  { %189 = vmatpush3.bf16.msra.mxu0 %v188_v10 }
  0x1f   :  { %190 = vmatprep.subr.bf16.mxu0 %v238_v0 }
  0x22   :  { %192 = vmatpush3.bf16.msra.mxu0 %v191_v13 }
  0x23   :  { %193 = vmatprep.subr.bf16.mxu0 %v238_v0 }
  0x26   :  { %195 = vmatpush3.bf16.msra.mxu0 %v194_v16 }
  0x27   :  { %196 = vmatprep.subr.bf16.mxu0 %v238_v0 }
  0x2a   :  { %198 = vmatpush3.bf16.msra.mxu0 %v197_v19 }
  0x2b   :  { %199 = vmatprep.subr.bf16.mxu0 %v238_v0 }
  0x2e   :  { %201 = vmatpush3.bf16.msra.mxu0 %v200_v22 }
  0x2f   :  { %202 = vmatprep.subr.bf16.mxu0 %v238_v0 }
  0x32   :  { %204 = vmatpush3.bf16.msra.mxu0 %v203_v25 }
  0x35   :  { %179 = vmatmul.mubr.f32.vlgmr.msra.gmra.mrb[0].mxu0 %v28_v26 }
 0x108   :  { %v118_v28 = vpop.f32.mrb[0].mxu0 }
 0x109   :  { %v119_v29 = vadd.f32 %v128_v27, %v118_v28  ;;  %v180_v30 = vpop.f32.mrb[1].mxu0 }
 0x10b   :  { %122 = vst [vmem:[%s285_s3] sm:$0xff] %v119_v29 }
 0x10c   :  { %127 = vsyncpa [#allocation3], 1 }

</bundles_post_ra>
